<compile_context>
chip_gen: v7x
topology: tpu7x:2x2x1
jax: 0.10.0
libtpu: 0.0.40
codegen_flags: <defaults>
</compile_context>

<pallas_src>
import jax
import jax.numpy as jnp
from jax.experimental import pallas as pl
from jax.experimental.pallas import tpu as pltpu


def _round_up(x, m):
    return (x + m - 1) // m * m


def ffn_kernel(x_ref, w1_ref, b1_ref, w2_ref, b2_ref, o_ref):
    # x_ref:  (TM, Hp) bf16   w1_ref: (Hp, Fp) bf16   b1_ref: (1, Fp) f32
    # w2_ref: (Fp, Hp) bf16   b2_ref: (1, Hp) f32     o_ref:  (TM, Hp)
    h = jnp.dot(x_ref[...], w1_ref[...], preferred_element_type=jnp.float32)
    h = jnp.maximum(h + b1_ref[...], 0.0)                 # bias + ReLU in f32
    # TODO(synk): dropout omitted (eval-mode identity); training-mode dropout
    #             would need pltpu.prng_seed + pltpu.prng_random_bits masking.
    y = jnp.dot(h.astype(w2_ref.dtype), w2_ref[...],
                preferred_element_type=jnp.float32)
    o_ref[...] = (y + b2_ref[...]).astype(o_ref.dtype)


def ffn_pallas(x, w1, b1, w2, b2, *, tm=1024, out_dtype=None):
    """x: (B, S, H); w1: (H, F); b1: (F,); w2: (F, H); b2: (H,).

    Weights are stored transposed (in, out) so the hot path is x @ W.
    `out_dtype=None` keeps the input dtype (PyTorch parity); pass jnp.bfloat16
    to halve the output-tile VMEM / writeback bytes when acceptable.
    """
    B, S, H = x.shape
    F = w1.shape[1]
    M = B * S

    out_dtype = x.dtype if out_dtype is None else out_dtype
    out_itemsize = jnp.dtype(out_dtype).itemsize

    # Lane-dense padded dims. Already-128-aligned dims are left untouched
    # (no wrapper pad/copy); odd dims round to 256 (2x256 MXU on v6e/v7x).
    Hp = H if H % 128 == 0 else _round_up(H, 256)
    Fp = F if F % 128 == 0 else _round_up(F, 256)

    # ---- Generation-aware VMEM budget (never clamp below the real need;
    # ---- shrink TM instead so the actual footprint fits). ----
    try:
        vmem_cap = int(pltpu.get_tpu_info().vmem_capacity_bytes)
    except Exception:
        vmem_cap = 64 << 20          # conservative fallback (v7x per-TC VMEM)
    vmem_budget = max(32 << 20, int(vmem_cap * 0.85))

    have_buffered = hasattr(pl, "Buffered")
    weight_bufs = 1 if have_buffered else 2   # single-buffered residents if possible

    def _vmem_need(TM, wb):
        return (
            2 * TM * Hp * 2                                  # x tile (bf16, dbl-buf)
            + 2 * TM * Hp * out_itemsize                     # out tile (dbl-buf)
            + wb * (Hp * Fp * 2 + Fp * Hp * 2 + Fp * 4 + Hp * 4)   # weights/biases
            + TM * Fp * 4 + TM * Fp * 2                      # f32 h + bf16 cast of h
            + TM * Hp * 4                                    # f32 y
            + (4 << 20)                                      # headroom / scratch
        )

    # ---- Token-tile selection ----
    TM = max(16, min(tm, _round_up(M, 16)))
    # Guarantee >=2 grid steps when M allows it (v7x: both TCs get work).
    if M >= 32 and _round_up(M, TM) // TM < 2:
        TM = _round_up((M + 1) // 2, 16)
    # Shrink TM (not the VMEM limit) until the real footprint fits the budget.
    while TM > 16 and _vmem_need(TM, weight_bufs) > vmem_budget:
        TM = max(16, _round_up(TM // 2, 16))

    Mp = _round_up(M, TM)
    grid = (Mp // TM,)

    # ---- Build inputs, skipping pad/copy passes when already aligned ----
    x_flat = x.reshape(M, H).astype(jnp.bfloat16)
    if Mp == M and Hp == H:
        x2 = x_flat
    else:
        x2 = jnp.zeros((Mp, Hp), jnp.bfloat16).at[:M, :H].set(x_flat)

    w1b = w1.astype(jnp.bfloat16)
    w2b = w2.astype(jnp.bfloat16)
    if Hp == H and Fp == F:
        w1p, w2p = w1b, w2b
        b1p = b1.astype(jnp.float32).reshape(1, F)
        b2p = b2.astype(jnp.float32).reshape(1, H)
    else:
        w1p = jnp.zeros((Hp, Fp), jnp.bfloat16).at[:H, :F].set(w1b)
        w2p = jnp.zeros((Fp, Hp), jnp.bfloat16).at[:F, :H].set(w2b)
        b1p = jnp.zeros((1, Fp), jnp.float32).at[0, :F].set(b1.astype(jnp.float32))
        b2p = jnp.zeros((1, Hp), jnp.float32).at[0, :H].set(b2.astype(jnp.float32))

    # Advisory cost estimate for the XLA scheduler.
    flops = 4 * Mp * Hp * Fp                         # two matmuls
    bytes_accessed = (
        Mp * Hp * 2                                  # x (bf16)
        + Hp * Fp * 2 + Fp * Hp * 2                  # w1, w2 (bf16)
        + Fp * 4 + Hp * 4                            # biases (f32)
        + Mp * Hp * out_itemsize                     # output
    )

    # Limit: at least the (worst-case, double-buffered-weights) need, capped
    # by the physical budget.  TM above was sized so the real need fits.
    vmem_limit = int(min(max(_vmem_need(TM, 2), 32 << 20), vmem_budget))

    def _build(weight_pipeline_mode):
        wkw = {}
        if weight_pipeline_mode is not None:
            wkw = dict(pipeline_mode=weight_pipeline_mode)
        return pl.pallas_call(
            ffn_kernel,
            out_shape=jax.ShapeDtypeStruct((Mp, Hp), out_dtype),
            grid_spec=pltpu.PrefetchScalarGridSpec(
                num_scalar_prefetch=0,
                grid=grid,
                in_specs=[
                    pl.BlockSpec((TM, Hp), lambda i: (i, 0)),          # x (pipelined)
                    pl.BlockSpec((Hp, Fp), lambda i: (0, 0), **wkw),   # w1 (resident)
                    pl.BlockSpec((1, Fp), lambda i: (0, 0), **wkw),    # b1 (resident)
                    pl.BlockSpec((Fp, Hp), lambda i: (0, 0), **wkw),   # w2 (resident)
                    pl.BlockSpec((1, Hp), lambda i: (0, 0), **wkw),    # b2 (resident)
                ],
                out_specs=pl.BlockSpec((TM, Hp), lambda i: (i, 0)),
            ),
            compiler_params=pltpu.CompilerParams(
                dimension_semantics=("parallel",),   # shard M across TCs on v7x
                vmem_limit_bytes=vmem_limit,
            ),
            cost_estimate=pl.CostEstimate(
                flops=flops, transcendentals=0, bytes_accessed=bytes_accessed),
        )

    single_buffer = pl.Buffered(1) if have_buffered else None
    try:
        out = _build(single_buffer)(x2, w1p, b1p, w2p, b2p)
    except Exception:
        if single_buffer is None:
            raise
        # Fallback: default double-buffered residents (still correct).
        out = _build(None)(x2, w1p, b1p, w2p, b2p)

    if Mp == M and Hp == H:
        return out.reshape(B, S, H)
    return out[:M, :H].reshape(B, S, H)


if __name__ == "__main__":
    # Small config consistent with the module: HIDDEN_SIZE=32, FF_SIZE=64.
    # (Pallas only pays off at production H/F/M; this is a correctness demo.)
    B, S, HIDDEN_SIZE, FF_SIZE = 2, 8, 32, 64

    key = jax.random.PRNGKey(0)
    kx, kw1, kb1, kw2, kb2 = jax.random.split(key, 5)

    x = jax.random.normal(kx, (B, S, HIDDEN_SIZE), dtype=jnp.float32)

    # Deterministic parameter init (nn.Linear-style uniform bounds),
    # stored transposed as (in, out) so the kernel computes x @ W directly.
    lim1 = 1.0 / (HIDDEN_SIZE ** 0.5)
    lim2 = 1.0 / (FF_SIZE ** 0.5)
    w1 = jax.random.uniform(kw1, (HIDDEN_SIZE, FF_SIZE), jnp.float32, -lim1, lim1)
    b1 = jax.random.uniform(kb1, (FF_SIZE,), jnp.float32, -lim1, lim1)
    w2 = jax.random.uniform(kw2, (FF_SIZE, HIDDEN_SIZE), jnp.float32, -lim2, lim2)
    b2 = jax.random.uniform(kb2, (HIDDEN_SIZE,), jnp.float32, -lim2, lim2)

    out = ffn_pallas(x, w1, b1, w2, b2)
    out = jax.block_until_ready(out)

    # Pure-JAX f32 reference.  Tolerance documents the bf16-MXU / f32-accum
    # precision contract (error ~1e-3 at these magnitudes).
    ref = jnp.maximum(x @ w1 + b1, 0.0) @ w2 + b2
    assert out.shape == (B, S, HIDDEN_SIZE)
    assert out.dtype == x.dtype
    assert jnp.allclose(out, ref, atol=3e-2, rtol=3e-2)

    print("KERNEL_OK")
</pallas_src>

<mosaic_0001>
module attributes {stable_mosaic.version = 11 : i64} {
  func.func @ffn_kernel(%arg0: i32, %arg1: memref<16x256xbf16, #tpu.memory_space<vmem>>, %arg2: memref<256x256xbf16, #tpu.memory_space<vmem>>, %arg3: memref<1x256xf32, #tpu.memory_space<vmem>>, %arg4: memref<256x256xbf16, #tpu.memory_space<vmem>>, %arg5: memref<1x256xf32, #tpu.memory_space<vmem>>, %arg6: memref<16x256xf32, #tpu.memory_space<vmem>>) attributes {dimension_semantics = [#tpu.dimension_semantics<parallel>], iteration_bounds = array<i64: 1>, scalar_prefetch = 0 : i64, scratch_operands = 0 : i64, tpu.core_type = #tpu.core_type<tc>, window_params = [{transform_indices = @transform_0, window_bounds = array<i64: 16, 256>}, {pipeline_mode = #tpu.pipeline_mode<synchronous>, transform_indices = @transform_1, window_bounds = array<i64: 256, 256>}, {pipeline_mode = #tpu.pipeline_mode<synchronous>, transform_indices = @transform_2, window_bounds = array<i64: 1, 256>}, {pipeline_mode = #tpu.pipeline_mode<synchronous>, transform_indices = @transform_3, window_bounds = array<i64: 256, 256>}, {pipeline_mode = #tpu.pipeline_mode<synchronous>, transform_indices = @transform_4, window_bounds = array<i64: 1, 256>}, {transform_indices = @transform_5, window_bounds = array<i64: 16, 256>}]} {
    %c0 = arith.constant 0 : index
    %c0_0 = arith.constant 0 : index
    %0 = vector.load %arg1[%c0, %c0_0] : memref<16x256xbf16, #tpu.memory_space<vmem>>, vector<16x256xbf16>
    %c0_1 = arith.constant 0 : index
    %c0_2 = arith.constant 0 : index
    %1 = vector.load %arg2[%c0_1, %c0_2] : memref<256x256xbf16, #tpu.memory_space<vmem>>, vector<256x256xbf16>
    %cst = arith.constant dense<0.000000e+00> : vector<16x256xf32>
    %2 = tpu.matmul %0, %1, %cst {dimension_numbers = #tpu.dot_dimension_numbers<[1], [0], [0], [1], [0, 0, 1, 1], [], []>} : vector<16x256xbf16>, vector<256x256xbf16>, vector<16x256xf32> -> vector<16x256xf32>
    %c0_3 = arith.constant 0 : index
    %c0_4 = arith.constant 0 : index
    %3 = vector.load %arg3[%c0_3, %c0_4] : memref<1x256xf32, #tpu.memory_space<vmem>>, vector<1x256xf32>
    %4 = vector.broadcast %3 : vector<1x256xf32> to vector<16x256xf32>
    %5 = arith.addf %2, %4 : vector<16x256xf32>
    %cst_5 = arith.constant 0.000000e+00 : f32
    %6 = vector.broadcast %cst_5 : f32 to vector<16x256xf32>
    %7 = arith.maximumf %5, %6 : vector<16x256xf32>
    %8 = arith.truncf %7 : vector<16x256xf32> to vector<16x256xbf16>
    %c0_6 = arith.constant 0 : index
    %c0_7 = arith.constant 0 : index
    %9 = vector.load %arg4[%c0_6, %c0_7] : memref<256x256xbf16, #tpu.memory_space<vmem>>, vector<256x256xbf16>
    %cst_8 = arith.constant dense<0.000000e+00> : vector<16x256xf32>
    %10 = tpu.matmul %8, %9, %cst_8 {dimension_numbers = #tpu.dot_dimension_numbers<[1], [0], [0], [1], [0, 0, 1, 1], [], []>} : vector<16x256xbf16>, vector<256x256xbf16>, vector<16x256xf32> -> vector<16x256xf32>
    %c0_9 = arith.constant 0 : index
    %c0_10 = arith.constant 0 : index
    %11 = vector.load %arg5[%c0_9, %c0_10] : memref<1x256xf32, #tpu.memory_space<vmem>>, vector<1x256xf32>
    %12 = vector.broadcast %11 : vector<1x256xf32> to vector<16x256xf32>
    %13 = arith.addf %10, %12 : vector<16x256xf32>
    %c0_11 = arith.constant 0 : index
    %c0_12 = arith.constant 0 : index
    %14 = vector.load %arg6[%c0_11, %c0_12] : memref<16x256xf32, #tpu.memory_space<vmem>>, vector<16x256xf32>
    tpu.vector_store %arg6[%c0_11, %c0_12], %13 {strides = array<i32>} : memref<16x256xf32, #tpu.memory_space<vmem>>, vector<16x256xf32>,
    return
  }
  func.func @transform_0(%arg0: i32) -> (i32, i32) {
    %c0_i32 = arith.constant 0 : i32
    %c0_i32_0 = arith.constant 0 : i32
    return %arg0, %c0_i32 : i32, i32
  }
  func.func @transform_1(%arg0: i32) -> (i32, i32) {
    %c0_i32 = arith.constant 0 : i32
    %c0_i32_0 = arith.constant 0 : i32
    %c0_i32_1 = arith.constant 0 : i32
    return %c0_i32, %c0_i32_0 : i32, i32
  }
  func.func @transform_2(%arg0: i32) -> (i32, i32) {
    %c0_i32 = arith.constant 0 : i32
    %c0_i32_0 = arith.constant 0 : i32
    %c0_i32_1 = arith.constant 0 : i32
    return %c0_i32, %c0_i32_0 : i32, i32
  }
  func.func @transform_3(%arg0: i32) -> (i32, i32) {
    %c0_i32 = arith.constant 0 : i32
    %c0_i32_0 = arith.constant 0 : i32
    %c0_i32_1 = arith.constant 0 : i32
    return %c0_i32, %c0_i32_0 : i32, i32
  }
  func.func @transform_4(%arg0: i32) -> (i32, i32) {
    %c0_i32 = arith.constant 0 : i32
    %c0_i32_0 = arith.constant 0 : i32
    %c0_i32_1 = arith.constant 0 : i32
    return %c0_i32, %c0_i32_0 : i32, i32
  }
  func.func @transform_5(%arg0: i32) -> (i32, i32) {
    %c0_i32 = arith.constant 0 : i32
    %c0_i32_0 = arith.constant 0 : i32
    return %arg0, %c0_i32 : i32, i32
  }
}

module attributes {stable_mosaic.version = 11 : i64} {
  func.func @ffn_kernel(%arg0: i32, %arg1: memref<16x256xbf16, #tpu.memory_space<vmem>>, %arg2: memref<256x256xbf16, #tpu.memory_space<vmem>>, %arg3: memref<1x256xf32, #tpu.memory_space<vmem>>, %arg4: memref<256x256xbf16, #tpu.memory_space<vmem>>, %arg5: memref<1x256xf32, #tpu.memory_space<vmem>>, %arg6: memref<16x256xf32, #tpu.memory_space<vmem>>) attributes {dimension_semantics = [#tpu.dimension_semantics<parallel>], iteration_bounds = array<i64: 1>, scalar_prefetch = 0 : i64, scratch_operands = 0 : i64, tpu.core_type = #tpu.core_type<tc>, window_params = [{transform_indices = @transform_0, window_bounds = array<i64: 16, 256>}, {pipeline_mode = #tpu.pipeline_mode<synchronous>, transform_indices = @transform_1, window_bounds = array<i64: 256, 256>}, {pipeline_mode = #tpu.pipeline_mode<synchronous>, transform_indices = @transform_2, window_bounds = array<i64: 1, 256>}, {pipeline_mode = #tpu.pipeline_mode<synchronous>, transform_indices = @transform_3, window_bounds = array<i64: 256, 256>}, {pipeline_mode = #tpu.pipeline_mode<synchronous>, transform_indices = @transform_4, window_bounds = array<i64: 1, 256>}, {transform_indices = @transform_5, window_bounds = array<i64: 16, 256>}]} {
    %c0 = arith.constant 0 : index
    %c0_0 = arith.constant 0 : index
    %0 = vector.load %arg1[%c0, %c0_0] : memref<16x256xbf16, #tpu.memory_space<vmem>>, vector<16x256xbf16>
    %c0_1 = arith.constant 0 : index
    %c0_2 = arith.constant 0 : index
    %1 = vector.load %arg2[%c0_1, %c0_2] : memref<256x256xbf16, #tpu.memory_space<vmem>>, vector<256x256xbf16>
    %cst = arith.constant dense<0.000000e+00> : vector<16x256xf32>
    %2 = tpu.matmul %0, %1, %cst {dimension_numbers = #tpu.dot_dimension_numbers<[1], [0], [0], [1], [0, 0, 1, 1], [], []>} : vector<16x256xbf16>, vector<256x256xbf16>, vector<16x256xf32> -> vector<16x256xf32>
    %c0_3 = arith.constant 0 : index
    %c0_4 = arith.constant 0 : index
    %3 = vector.load %arg3[%c0_3, %c0_4] : memref<1x256xf32, #tpu.memory_space<vmem>>, vector<1x256xf32>
    %4 = vector.broadcast %3 : vector<1x256xf32> to vector<16x256xf32>
    %5 = arith.addf %2, %4 : vector<16x256xf32>
    %cst_5 = arith.constant 0.000000e+00 : f32
    %6 = vector.broadcast %cst_5 : f32 to vector<16x256xf32>
    %7 = arith.maximumf %5, %6 : vector<16x256xf32>
    %8 = arith.truncf %7 : vector<16x256xf32> to vector<16x256xbf16>
    %c0_6 = arith.constant 0 : index
    %c0_7 = arith.constant 0 : index
    %9 = vector.load %arg4[%c0_6, %c0_7] : memref<256x256xbf16, #tpu.memory_space<vmem>>, vector<256x256xbf16>
    %cst_8 = arith.constant dense<0.000000e+00> : vector<16x256xf32>
    %10 = tpu.matmul %8, %9, %cst_8 {dimension_numbers = #tpu.dot_dimension_numbers<[1], [0], [0], [1], [0, 0, 1, 1], [], []>} : vector<16x256xbf16>, vector<256x256xbf16>, vector<16x256xf32> -> vector<16x256xf32>
    %c0_9 = arith.constant 0 : index
    %c0_10 = arith.constant 0 : index
    %11 = vector.load %arg5[%c0_9, %c0_10] : memref<1x256xf32, #tpu.memory_space<vmem>>, vector<1x256xf32>
    %12 = vector.broadcast %11 : vector<1x256xf32> to vector<16x256xf32>
    %13 = arith.addf %10, %12 : vector<16x256xf32>
    %c0_11 = arith.constant 0 : index
    %c0_12 = arith.constant 0 : index
    %14 = vector.load %arg6[%c0_11, %c0_12] : memref<16x256xf32, #tpu.memory_space<vmem>>, vector<16x256xf32>
    tpu.vector_store %arg6[%c0_11, %c0_12], %13 {strides = array<i32>} : memref<16x256xf32, #tpu.memory_space<vmem>>, vector<16x256xf32>,
    return
  }
  func.func @transform_0(%arg0: i32) -> (i32, i32) {
    %c0_i32 = arith.constant 0 : i32
    %c0_i32_0 = arith.constant 0 : i32
    return %arg0, %c0_i32 : i32, i32
  }
  func.func @transform_1(%arg0: i32) -> (i32, i32) {
    %c0_i32 = arith.constant 0 : i32
    %c0_i32_0 = arith.constant 0 : i32
    %c0_i32_1 = arith.constant 0 : i32
    return %c0_i32, %c0_i32_0 : i32, i32
  }
  func.func @transform_2(%arg0: i32) -> (i32, i32) {
    %c0_i32 = arith.constant 0 : i32
    %c0_i32_0 = arith.constant 0 : i32
    %c0_i32_1 = arith.constant 0 : i32
    return %c0_i32, %c0_i32_0 : i32, i32
  }
  func.func @transform_3(%arg0: i32) -> (i32, i32) {
    %c0_i32 = arith.constant 0 : i32
    %c0_i32_0 = arith.constant 0 : i32
    %c0_i32_1 = arith.constant 0 : i32
    return %c0_i32, %c0_i32_0 : i32, i32
  }
  func.func @transform_4(%arg0: i32) -> (i32, i32) {
    %c0_i32 = arith.constant 0 : i32
    %c0_i32_0 = arith.constant 0 : i32
    %c0_i32_1 = arith.constant 0 : i32
    return %c0_i32, %c0_i32_0 : i32, i32
  }
  func.func @transform_5(%arg0: i32) -> (i32, i32) {
    %c0_i32 = arith.constant 0 : i32
    %c0_i32_0 = arith.constant 0 : i32
    return %arg0, %c0_i32 : i32, i32
  }
}

</mosaic_0001>

<bundles_post_ra>
// kernel: tpu_custom_call.1
= control target key start
LH: loop header
LB: loop body
LE: loop exit
PB: predicated region body
PF: predicated region fallthrough
CT: control target
= control target key end

     0   :  { %10 = vsyncpa [#allocation3], 0  ;;  %s971_s0 = inlined_call_operand.hbm [shape: bf16[16,256], index: 0, kind: input, shape index: {}]   ;;  %s972_s1 = inlined_call_operand.hbm [shape: bf16[256,256], index: 1, kind: input, shape index: {}]   ;;  %s973_s2 = inlined_call_operand.vmem [shape: f32[1,256], index: 2, kind: input, shape index: {}]   ;;  %s974_s3 = inlined_call_operand.hbm [shape: bf16[256,256], index: 3, kind: input, shape index: {}]   ;;  %s975_s4 = inlined_call_operand.vmem [shape: f32[1,256], index: 4, kind: input, shape index: {}]   ;;  %s976_s5 = inlined_call_operand.hbm [shape: f32[16,256], index: 5, kind: output, shape index: {}]  }
   0x1   :  { %11 = vsyncpa [#allocation6], 0 }
   0x2   :  { %12 = vsyncpa [#allocation4], 0  ;;  %s863_s18 = smov [#allocation5]   ;;  %s864_s20 = smov [#allocation2]  }
   0x3   :  { %s30_s19 = sshll.u32 %s863_s18, 4  ;;  %s18_s21 = sshll.u32 %s864_s20, 4  ;;  %s31_s19 = int_to_ptr.vmem [resolvable:$true] %s30_s19  ;;  %s901_s21 = int_to_ptr.vmem [resolvable:$true] %s18_s21 }
   0x4   :  { %s769_s24 = scalar_lea.hbm %s972_s1, 4096 }
   0x5   :  { %p770_p0 = scmp.ne.s32.totalorder %s972_s1, %s769_s24  ;;  %p773_p1 = scmp.lt.u32.totalorder %s769_s24, %s972_s1 }
   0x7   :  { %p775_p2 = pnand %p773_p1, %p770_p0 }
   0x9   :  { %778 = shalt.err (!%p775_p2)
}
   0xa   :  { %s779_s29 = scalar_lea.vmem %s31_s19, 4096  ;;  %p784_p4 = scmp.lt.s32.totalorder %s31_s19, %s31_s19 }
   0xb   :  { %p780_p3 = scmp.ne.s32.totalorder %s31_s19, %s779_s29  ;;  %p785_p5 = scmp.lt.s32.totalorder %s779_s29, %s779_s29 }
   0xd   :  { %p786_p6 = por %p785_p5, %p784_p4 }
   0xf   :  { %p787_p7 = pnand %p786_p6, %p780_p3 }
  0x11   :  { %790 = shalt.err (!%p787_p7)
}
  0x12   :  { %s865_s30 = smov 128   ;;  %s866_s6 = smov 8  }
  0x13   :  { %36 = dma.hbm_to_vmem [thread:$0]  %s972_s1, 4096, %s31_s19, [#allocation6], %s865_s30, %s865_s30, %s866_s6  }
  0x14   :  { %s791_s11 = scalar_lea.hbm %s971_s0, 256 }
  0x15   :  { %p792_p8 = scmp.ne.s32.totalorder %s971_s0, %s791_s11  ;;  %p795_p9 = scmp.lt.u32.totalorder %s791_s11, %s971_s0 }
  0x17   :  { %p797_p10 = pnand %p795_p9, %p792_p8 }
  0x19   :  { %800 = shalt.err (!%p797_p10)
}
  0x1a   :  { %s801_s16 = scalar_lea.vmem %s901_s21, 256  ;;  %p806_p12 = scmp.lt.s32.totalorder %s901_s21, %s901_s21 }
  0x1b   :  { %p802_p11 = scmp.ne.s32.totalorder %s901_s21, %s801_s16  ;;  %p807_p13 = scmp.lt.s32.totalorder %s801_s16, %s801_s16 }
  0x1d   :  { %p808_p0 = por %p807_p13, %p806_p12 }
  0x1f   :  { %p809_p1 = pnand %p808_p0, %p802_p11 }
  0x21   :  { %812 = shalt.err (!%p809_p1)
}
  0x22   :  { %24 = dma.hbm_to_vmem [thread:$0]  %s971_s0, 256, %s901_s21, [#allocation3], %s865_s30, %s865_s30, %s866_s6  }
  0x23   :  { %s867_s18 = smov [#allocation7]   ;;  %s813_s23 = scalar_lea.hbm %s974_s3, 4096 }
  0x24   :  { %s44_s19 = sshll.u32 %s867_s18, 4  ;;  %p814_p2 = scmp.ne.s32.totalorder %s974_s3, %s813_s23  ;;  %s45_s19 = int_to_ptr.vmem [resolvable:$true] %s44_s19 }
  0x25   :  { %p817_p3 = scmp.lt.u32.totalorder %s813_s23, %s974_s3 }
  0x27   :  { %p819_p4 = pnand %p817_p3, %p814_p2 }
  0x29   :  { %822 = shalt.err (!%p819_p4)
}
  0x2a   :  { %s823_s28 = scalar_lea.vmem %s45_s19, 4096  ;;  %p828_p6 = scmp.lt.s32.totalorder %s45_s19, %s45_s19 }
  0x2b   :  { %p824_p5 = scmp.ne.s32.totalorder %s45_s19, %s823_s28  ;;  %p829_p7 = scmp.lt.s32.totalorder %s823_s28, %s823_s28 }
  0x2d   :  { %p830_p8 = por %p829_p7, %p828_p6 }
  0x2f   :  { %p831_p9 = pnand %p830_p8, %p824_p5 }
  0x31   :  { %834 = shalt.err (!%p831_p9)
}
  0x32   :  { %50 = dma.hbm_to_vmem [thread:$0]  %s974_s3, 4096, %s45_s19, [#allocation6], %s865_s30, %s865_s30, %s866_s6  }
  0x33   :  { %857 = dma.done.wait [#allocation3], 256  }
  0x34   :  { %858 = vsyncadd [#allocation3], 4294967040 }
  0x35   :  { %859 = dma.done.wait [#allocation6], 8192  }
  0x36   :  { %860 = vsyncadd [#allocation6], 4294959104  ;;  %v670_v0 = vld [vmem:[#allocation5 + $0x4] ss:$8 sps:$4 sm:$0xff]   ;;  %v672_v1 = vld [vmem:[#allocation5] ss:$8 sps:$4 sm:$0xff]  }
  0x37   :  { %278 = vmatprep.subr.bf16.mxu0 %v670_v0  ;;  %v673_v2 = vld [vmem:[#allocation5 + $0x14] ss:$8 sps:$4 sm:$0xff]   ;;  %v675_v3 = vld [vmem:[#allocation5 + $0x10] ss:$8 sps:$4 sm:$0xff]   ;;  %v676_v4 = vld [vmem:[#allocation5 + $0x24] ss:$8 sps:$4 sm:$0xff]  }
  0x38   :  { %279 = vmatpush1.bf16.msra.mxu0 %v672_v1  ;;  %v678_v5 = vld [vmem:[#allocation5 + $0x20] ss:$8 sps:$4 sm:$0xff]   ;;  %v679_v6 = vld [vmem:[#allocation5 + $0x34] ss:$8 sps:$4 sm:$0xff]   ;;  %v681_v7 = vld [vmem:[#allocation5 + $0x30] ss:$8 sps:$4 sm:$0xff]  }
  0x39   :  { %280 = vmatprep.subr.bf16.mxu0 %v673_v2  ;;  %v682_v8 = vld [vmem:[#allocation5 + $0x44] ss:$8 sps:$4 sm:$0xff]   ;;  %v684_v9 = vld [vmem:[#allocation5 + $0x40] ss:$8 sps:$4 sm:$0xff]   ;;  %v685_v10 = vld [vmem:[#allocation5 + $0x54] ss:$8 sps:$4 sm:$0xff]   ;;  %v98_v2 = vlaneseq }
  0x3a   :  { %v687_v11 = vld [vmem:[#allocation5 + $0x50] ss:$8 sps:$4 sm:$0xff]   ;;  %v688_v12 = vld [vmem:[#allocation5 + $0x64] ss:$8 sps:$4 sm:$0xff]   ;;  %v690_v13 = vld [vmem:[#allocation5 + $0x60] ss:$8 sps:$4 sm:$0xff]  }
  0x3b   :  { %v691_v14 = vld [vmem:[#allocation5 + $0x74] ss:$8 sps:$4 sm:$0xff]   ;;  %v721_v16 = vld [vmem:[#allocation7 + $0x4] ss:$8 sps:$4 sm:$0xff]   ;;  %v723_v17 = vld [vmem:[#allocation7] ss:$8 sps:$4 sm:$0xff]  }
  0x3c   :  { %281 = vmatpush1.bf16.msra.mxu0 %v675_v3  ;;  %v720_v15 = vld [vmem:[#allocation2 + $0x4] ss:$8 sps:$4 sm:$0xff]   ;;  %531 = vmatprep.subr.bf16.mxu1 %v721_v16  ;;  %v726_v19 = vld [vmem:[#allocation7 + $0x10] ss:$8 sps:$4 sm:$0xff]   ;;  %v727_v21 = vld [vmem:[#allocation7 + $0x24] ss:$8 sps:$4 sm:$0xff]  }
  0x3d   :  { %282 = vmatprep.subr.bf16.mxu0 %v676_v4  ;;  %310 = vmatprep.mubr.bf16.mxu0 %v720_v15  ;;  %v724_v18 = vld [vmem:[#allocation7 + $0x14] ss:$8 sps:$4 sm:$0xff]   ;;  %v693_v20 = vld [vmem:[#allocation5 + $0x70] ss:$8 sps:$4 sm:$0xff]   ;;  %v694_v22 = vld [vmem:[#allocation5 + $0x84] ss:$8 sps:$4 sm:$0xff]  }
  0x3e   :  { %532 = vmatpush1.bf16.msra.mxu1 %v723_v17  ;;  %v729_v23 = vld [vmem:[#allocation7 + $0x20] ss:$8 sps:$4 sm:$0xff]   ;;  %v730_v25 = vld [vmem:[#allocation7 + $0x34] ss:$8 sps:$4 sm:$0xff]   ;;  %v732_v27 = vld [vmem:[#allocation7 + $0x30] ss:$8 sps:$4 sm:$0xff]  }
  0x3f   :  { %533 = vmatprep.subr.bf16.mxu1 %v724_v18  ;;  %v696_v24 = vld [vmem:[#allocation5 + $0x80] ss:$8 sps:$4 sm:$0xff]   ;;  %v697_v26 = vld [vmem:[#allocation5 + $0x94] ss:$8 sps:$4 sm:$0xff]   ;;  %v699_v28 = vld [vmem:[#allocation5 + $0x90] ss:$8 sps:$4 sm:$0xff]  }
  0x40   :  { %283 = vmatpush1.bf16.msra.mxu0 %v678_v5  ;;  %v733_v29 = vld [vmem:[#allocation7 + $0x44] ss:$8 sps:$4 sm:$0xff]   ;;  %v735_v31 = vld [vmem:[#allocation7 + $0x40] ss:$8 sps:$4 sm:$0xff]   ;;  %v736_v33 = vld [vmem:[#allocation7 + $0x54] ss:$8 sps:$4 sm:$0xff]  }
  0x41   :  { %284 = vmatprep.subr.bf16.mxu0 %v679_v6  ;;  %v700_v30 = vld [vmem:[#allocation5 + $0xa4] ss:$8 sps:$4 sm:$0xff]   ;;  %v702_v32 = vld [vmem:[#allocation5 + $0xa0] ss:$8 sps:$4 sm:$0xff]   ;;  %v703_v34 = vld [vmem:[#allocation5 + $0xb4] ss:$8 sps:$4 sm:$0xff]  }
  0x42   :  { %534 = vmatpush1.bf16.msra.mxu1 %v726_v19  ;;  %v738_v35 = vld [vmem:[#allocation7 + $0x50] ss:$8 sps:$4 sm:$0xff]   ;;  %v739_v37 = vld [vmem:[#allocation7 + $0x64] ss:$8 sps:$4 sm:$0xff]   ;;  %v741_v39 = vld [vmem:[#allocation7 + $0x60] ss:$8 sps:$4 sm:$0xff]  }
  0x43   :  { %535 = vmatprep.subr.bf16.mxu1 %v727_v21  ;;  %v705_v36 = vld [vmem:[#allocation5 + $0xb0] ss:$8 sps:$4 sm:$0xff]   ;;  %v706_v38 = vld [vmem:[#allocation5 + $0xc4] ss:$8 sps:$4 sm:$0xff]   ;;  %v708_v40 = vld [vmem:[#allocation5 + $0xc0] ss:$8 sps:$4 sm:$0xff]  }
  0x44   :  { %285 = vmatpush1.bf16.msra.mxu0 %v681_v7  ;;  %v742_v41 = vld [vmem:[#allocation7 + $0x74] ss:$8 sps:$4 sm:$0xff]   ;;  %v744_v43 = vld [vmem:[#allocation7 + $0x70] ss:$8 sps:$4 sm:$0xff]   ;;  %v745_v45 = vld [vmem:[#allocation7 + $0x84] ss:$8 sps:$4 sm:$0xff]  }
  0x45   :  { %286 = vmatprep.subr.bf16.mxu0 %v682_v8  ;;  %v709_v42 = vld [vmem:[#allocation5 + $0xd4] ss:$8 sps:$4 sm:$0xff]   ;;  %v711_v44 = vld [vmem:[#allocation5 + $0xd0] ss:$8 sps:$4 sm:$0xff]   ;;  %v712_v46 = vld [vmem:[#allocation5 + $0xe4] ss:$8 sps:$4 sm:$0xff]  }
  0x46   :  { %536 = vmatpush1.bf16.msra.mxu1 %v729_v23  ;;  %v747_v47 = vld [vmem:[#allocation7 + $0x80] ss:$8 sps:$4 sm:$0xff]   ;;  %v748_v49 = vld [vmem:[#allocation7 + $0x94] ss:$8 sps:$4 sm:$0xff]   ;;  %v750_v51 = vld [vmem:[#allocation7 + $0x90] ss:$8 sps:$4 sm:$0xff]  }
  0x47   :  { %537 = vmatprep.subr.bf16.mxu1 %v730_v25  ;;  %v714_v48 = vld [vmem:[#allocation5 + $0xe0] ss:$8 sps:$4 sm:$0xff]   ;;  %v715_v50 = vld [vmem:[#allocation5 + $0xf4] ss:$8 sps:$4 sm:$0xff]   ;;  %v717_v52 = vld [vmem:[#allocation5 + $0xf0] ss:$8 sps:$4 sm:$0xff]  }
  0x48   :  { %287 = vmatpush1.bf16.msra.mxu0 %v684_v9  ;;  %v751_v53 = vld [vmem:[#allocation7 + $0xa4] ss:$8 sps:$4 sm:$0xff]   ;;  %v718_v54 = vld [vmem:[#allocation2] ss:$8 sps:$4 sm:$0xff]   ;;  %v753_v55 = vld [vmem:[#allocation7 + $0xa0] ss:$8 sps:$4 sm:$0xff]  }
  0x49   :  { %288 = vmatprep.subr.bf16.mxu0 %v685_v10  ;;  %v754_v56 = vld [vmem:[#allocation7 + $0xb4] ss:$8 sps:$4 sm:$0xff]   ;;  %v756_v57 = vld [vmem:[#allocation7 + $0xb0] ss:$8 sps:$4 sm:$0xff]   ;;  %v757_v58 = vld [vmem:[#allocation7 + $0xc4] ss:$8 sps:$4 sm:$0xff]  }
  0x4a   :  { %538 = vmatpush1.bf16.msra.mxu1 %v732_v27  ;;  %v759_v59 = vld [vmem:[#allocation7 + $0xc0] ss:$8 sps:$4 sm:$0xff]   ;;  %v760_v60 = vld [vmem:[#allocation7 + $0xd4] ss:$8 sps:$4 sm:$0xff]   ;;  %v762_v61 = vld [vmem:[#allocation7 + $0xd0] ss:$8 sps:$4 sm:$0xff]  }
  0x4b   :  { %539 = vmatprep.subr.bf16.mxu1 %v733_v29  ;;  %v763_v62 = vld [vmem:[#allocation7 + $0xe4] ss:$8 sps:$4 sm:$0xff]   ;;  %v765_v63 = vld [vmem:[#allocation7 + $0xe0] ss:$8 sps:$4 sm:$0xff]   ;;  %v766_v0 = vld [vmem:[#allocation7 + $0xf4] ss:$8 sps:$4 sm:$0xff]  }
  0x4c   :  { %289 = vmatpush1.bf16.msra.mxu0 %v687_v11  ;;  %v768_v1 = vld [vmem:[#allocation7 + $0xf0] ss:$8 sps:$4 sm:$0xff]   ;;  %v99_v3 = vshrl.u32 %v98_v2, 7  ;;  %s868_s6 = smov [#allocation8]  }
  0x4d   :  { %290 = vmatprep.subr.bf16.mxu0 %v688_v12  ;;  %v96_v5 = vld [vmem:[%s973_s2] sm:$0x3]  ;;  %s583_s7 = sshll.u32 %s868_s6, 4  ;;  %s584_s7 = int_to_ptr.vmem [resolvable:$true] %s583_s7 }
  0x4e   :  { %540 = vmatpush1.bf16.msra.mxu1 %v735_v31  ;;  %v100_v4 = vsub.s32 0, %v99_v3  ;;  %v104_v6 = vsub.s32 1, %v99_v3  ;;  %v359_v23 = vld [vmem:[%s975_s4] sm:$0x3]  ;;  %s835_s8 = scalar_lea.vmem %s584_s7, 512  ;;  %p840_p11 = scmp.lt.s32.totalorder %s584_s7, %s584_s7 }
  0x4f   :  { %541 = vmatprep.subr.bf16.mxu1 %v736_v33  ;;  %p836_p10 = scmp.ne.s32.totalorder %s584_s7, %s835_s8  ;;  %p841_p12 = scmp.lt.s32.totalorder %s835_s8, %s835_s8 }
  0x50   :  { %291 = vmatpush1.bf16.msra.mxu0 %v690_v13  ;;  %v101_v7 = vrot.slane %v96_v5, %v100_v4  ;;  %v105_v8 = vrot.slane %v96_v5, %v104_v6  ;;  %v368_v25 = vrot.slane %v359_v23, %v104_v6 }
  0x51   :  { %292 = vmatprep.subr.bf16.mxu0 %v691_v14  ;;  %p842_p13 = por %p841_p12, %p840_p11 }
  0x52   :  { %542 = vmatpush1.bf16.msra.mxu1 %v738_v35 }
  0x53   :  { %543 = vmatprep.subr.bf16.mxu1 %v739_v37  ;;  %p843_p0 = pnand %p842_p13, %p836_p10 }
  0x54   :  { %293 = vmatpush1.bf16.msra.mxu0 %v693_v20 }
  0x55   :  { %294 = vmatprep.subr.bf16.mxu0 %v694_v22 }
  0x56   :  { %544 = vmatpush1.bf16.msra.mxu1 %v741_v39 }
  0x57   :  { %545 = vmatprep.subr.bf16.mxu1 %v742_v41 }
  0x58   :  { %295 = vmatpush1.bf16.msra.mxu0 %v696_v24  ;;  %v364_v24 = vrot.slane %v359_v23, %v100_v4 }
  0x59   :  { %296 = vmatprep.subr.bf16.mxu0 %v697_v26 }
  0x5a   :  { %546 = vmatpush1.bf16.msra.mxu1 %v744_v43 }
  0x5b   :  { %547 = vmatprep.subr.bf16.mxu1 %v745_v45 }
  0x5c   :  { %297 = vmatpush1.bf16.msra.mxu0 %v699_v28 }
  0x5d   :  { %298 = vmatprep.subr.bf16.mxu0 %v700_v30 }
  0x5e   :  { %548 = vmatpush1.bf16.msra.mxu1 %v747_v47 }
  0x5f   :  { %549 = vmatprep.subr.bf16.mxu1 %v748_v49 }
  0x60   :  { %299 = vmatpush1.bf16.msra.mxu0 %v702_v32 }
  0x61   :  { %300 = vmatprep.subr.bf16.mxu0 %v703_v34 }
  0x62   :  { %550 = vmatpush1.bf16.msra.mxu1 %v750_v51 }
  0x63   :  { %551 = vmatprep.subr.bf16.mxu1 %v751_v53 }
  0x64   :  { %301 = vmatpush1.bf16.msra.mxu0 %v705_v36 }
  0x65   :  { %302 = vmatprep.subr.bf16.mxu0 %v706_v38 }
  0x66   :  { %552 = vmatpush1.bf16.msra.mxu1 %v753_v55 }
  0x67   :  { %553 = vmatprep.subr.bf16.mxu1 %v754_v56 }
  0x68   :  { %303 = vmatpush1.bf16.msra.mxu0 %v708_v40 }
  0x69   :  { %304 = vmatprep.subr.bf16.mxu0 %v709_v42 }
  0x6a   :  { %554 = vmatpush1.bf16.msra.mxu1 %v756_v57 }
  0x6b   :  { %555 = vmatprep.subr.bf16.mxu1 %v757_v58 }
  0x6c   :  { %305 = vmatpush1.bf16.msra.mxu0 %v711_v44 }
  0x6d   :  { %306 = vmatprep.subr.bf16.mxu0 %v712_v46 }
  0x6e   :  { %556 = vmatpush1.bf16.msra.mxu1 %v759_v59 }
  0x6f   :  { %557 = vmatprep.subr.bf16.mxu1 %v760_v60 }
  0x70   :  { %307 = vmatpush1.bf16.msra.mxu0 %v714_v48 }
  0x71   :  { %308 = vmatprep.subr.bf16.mxu0 %v715_v50 }
  0x72   :  { %558 = vmatpush1.bf16.msra.mxu1 %v762_v61 }
  0x73   :  { %559 = vmatprep.subr.bf16.mxu1 %v763_v62 }
  0x74   :  { %309 = vmatpush1.bf16.msra.mxu0 %v717_v52 }
  0x76   :  { %560 = vmatpush1.bf16.msra.mxu1 %v765_v63 }
  0x77   :  { %311 = vmatmul.mubr.bf16.vlgmr.msra.gmra.mrb[0].mxu0 %v718_v54  ;;  %561 = vmatprep.subr.bf16.mxu1 %v766_v0 }
  0x7a   :  { %562 = vmatpush1.bf16.msra.mxu1 %v768_v1 }
 0x14a   :  { %v312_v9 = vpop.f32.mrb[0].mxu0 }
 0x14b   :  { %v313_v10 = vadd.f32 %v312_v9, %v101_v7  ;;  %v314_v11 = vpop.f32.mrb[1].mxu0 }
 0x14c   :  { %v315_v12 = vadd.f32 %v314_v11, %v105_v8  ;;  %v316_v13 = vpop.f32.mrb[2].mxu0 }
 0x14d   :  { %v317_v14 = vadd.f32 %v316_v13, %v101_v7  ;;  %v318_v15 = vpop.f32.mrb[3].mxu0  ;;  %v321_v17 = vmax.f32 %v313_v10, 0.0 }
 0x14e   :  { %v319_v16 = vadd.f32 %v318_v15, %v105_v8  ;;  %v322_v19 = vmax.f32 %v315_v12, 0.0 }
 0x14f   :  { %v323_v18 = vmax.f32 %v317_v14, 0.0 }
 0x150   :  { %v324_v20 = vmax.f32 %v319_v16, 0.0 }
 0x151   :  { %v325_v21 = vpack.c.bf16 %v323_v18, %v321_v17 }
 0x152   :  { %v326_v22 = vpack.c.bf16 %v324_v20, %v322_v19 }
 0x154   :  { %563 = vmatprep.mubr.bf16.mxu1 %v326_v22 }
 0x155   :  { %564 = vmatmul.mubr.bf16.vlgmr.msra.gmra.mrb[0].mxu1 %v325_v21 }
 0x228   :  { %v565_v26 = vpop.f32.mrb[0].mxu1 }
 0x229   :  { %v566_v27 = vadd.f32 %v565_v26, %v364_v24  ;;  %v567_v28 = vpop.f32.mrb[1].mxu1 }
 0x22a   :  { %v568_v29 = vadd.f32 %v567_v28, %v368_v25  ;;  %v569_v30 = vpop.f32.mrb[2].mxu1 }
 0x22b   :  { %574 = vst [vmem:[#allocation8] sm:$0xff] %v566_v27  ;;  %v570_v31 = vadd.f32 %v569_v30, %v364_v24  ;;  %v571_v32 = vpop.f32.mrb[3].mxu1 }
 0x22c   :  { %575 = vst [vmem:[#allocation8 + $0x8] sm:$0xff] %v568_v29  ;;  %v572_v33 = vadd.f32 %v571_v32, %v368_v25 }
 0x22d   :  { %576 = vst [vmem:[#allocation8 + $0x10] sm:$0xff] %v570_v31 }
 0x22e   :  { %577 = vst [vmem:[#allocation8 + $0x18] sm:$0xff] %v572_v33 }
 0x22f   :  { %846 = shalt.err (!%p843_p0)
}
 0x230   :  { %s847_s10 = scalar_lea.hbm %s976_s5, 512 }
 0x231   :  { %p848_p1 = scmp.ne.s32.totalorder %s976_s5, %s847_s10  ;;  %p851_p2 = scmp.lt.u32.totalorder %s847_s10, %s976_s5 }
 0x233   :  { %p853_p3 = pnand %p851_p2, %p848_p1 }
 0x235   :  { %856 = shalt.err (!%p853_p3)
}
 0x236   :  { %s869_s15 = smov 256   ;;  %s870_s16 = smov 16  }
 0x237   :  { %589 = dma.vmem_to_hbm [thread:$0]  %s584_s7, 512, %s976_s5, [#allocation4], %s869_s15, %s869_s15, %s870_s16  }
 0x238   :  { %861 = dma.done.wait [#allocation4], 512  }
 0x239   :  { %862 = vsyncadd [#allocation4], 4294966784 }
 0x23a   :  { %593 = vsyncpa [#allocation3], 1 }
 0x23b   :  { %594 = vsyncpa [#allocation6], 1 }
 0x23c   :  { %595 = vsyncpa [#allocation4], 1 }

// kernel: tpu_custom_call.1
= control target key start
LH: loop header
LB: loop body
LE: loop exit
PB: predicated region body
PF: predicated region fallthrough
CT: control target
= control target key end

     0   :  { %10 = vsyncpa [#allocation3], 0  ;;  %s971_s0 = inlined_call_operand.hbm [shape: bf16[16,256], index: 0, kind: input, shape index: {}]   ;;  %s972_s1 = inlined_call_operand.hbm [shape: bf16[256,256], index: 1, kind: input, shape index: {}]   ;;  %s973_s2 = inlined_call_operand.vmem [shape: f32[1,256], index: 2, kind: input, shape index: {}]   ;;  %s974_s3 = inlined_call_operand.hbm [shape: bf16[256,256], index: 3, kind: input, shape index: {}]   ;;  %s975_s4 = inlined_call_operand.vmem [shape: f32[1,256], index: 4, kind: input, shape index: {}]   ;;  %s976_s5 = inlined_call_operand.hbm [shape: f32[16,256], index: 5, kind: output, shape index: {}]  }
   0x1   :  { %11 = vsyncpa [#allocation6], 0 }
   0x2   :  { %12 = vsyncpa [#allocation4], 0  ;;  %s863_s18 = smov [#allocation5]   ;;  %s864_s20 = smov [#allocation2]  }
   0x3   :  { %s30_s19 = sshll.u32 %s863_s18, 4  ;;  %s18_s21 = sshll.u32 %s864_s20, 4  ;;  %s31_s19 = int_to_ptr.vmem [resolvable:$true] %s30_s19  ;;  %s901_s21 = int_to_ptr.vmem [resolvable:$true] %s18_s21 }
   0x4   :  { %s769_s24 = scalar_lea.hbm %s972_s1, 4096 }
   0x5   :  { %p770_p0 = scmp.ne.s32.totalorder %s972_s1, %s769_s24  ;;  %p773_p1 = scmp.lt.u32.totalorder %s769_s24, %s972_s1 }
   0x7   :  { %p775_p2 = pnand %p773_p1, %p770_p0 }
   0x9   :  { %778 = shalt.err (!%p775_p2)
}
   0xa   :  { %s779_s29 = scalar_lea.vmem %s31_s19, 4096  ;;  %p784_p4 = scmp.lt.s32.totalorder %s31_s19, %s31_s19 }
   0xb   :  { %p780_p3 = scmp.ne.s32.totalorder %s31_s19, %s779_s29  ;;  %p785_p5 = scmp.lt.s32.totalorder %s779_s29, %s779_s29 }
   0xd   :  { %p786_p6 = por %p785_p5, %p784_p4 }
   0xf   :  { %p787_p7 = pnand %p786_p6, %p780_p3 }
  0x11   :  { %790 = shalt.err (!%p787_p7)
}
  0x12   :  { %s865_s30 = smov 128   ;;  %s866_s6 = smov 8  }
  0x13   :  { %36 = dma.hbm_to_vmem [thread:$0]  %s972_s1, 4096, %s31_s19, [#allocation6], %s865_s30, %s865_s30, %s866_s6  }
  0x14   :  { %s791_s11 = scalar_lea.hbm %s971_s0, 256 }
  0x15   :  { %p792_p8 = scmp.ne.s32.totalorder %s971_s0, %s791_s11  ;;  %p795_p9 = scmp.lt.u32.totalorder %s791_s11, %s971_s0 }
  0x17   :  { %p797_p10 = pnand %p795_p9, %p792_p8 }
  0x19   :  { %800 = shalt.err (!%p797_p10)
}
  0x1a   :  { %s801_s16 = scalar_lea.vmem %s901_s21, 256  ;;  %p806_p12 = scmp.lt.s32.totalorder %s901_s21, %s901_s21 }
  0x1b   :  { %p802_p11 = scmp.ne.s32.totalorder %s901_s21, %s801_s16  ;;  %p807_p13 = scmp.lt.s32.totalorder %s801_s16, %s801_s16 }
  0x1d   :  { %p808_p0 = por %p807_p13, %p806_p12 }
  0x1f   :  { %p809_p1 = pnand %p808_p0, %p802_p11 }
  0x21   :  { %812 = shalt.err (!%p809_p1)
}
  0x22   :  { %24 = dma.hbm_to_vmem [thread:$0]  %s971_s0, 256, %s901_s21, [#allocation3], %s865_s30, %s865_s30, %s866_s6  }
  0x23   :  { %s867_s18 = smov [#allocation7]   ;;  %s813_s23 = scalar_lea.hbm %s974_s3, 4096 }
  0x24   :  { %s44_s19 = sshll.u32 %s867_s18, 4  ;;  %p814_p2 = scmp.ne.s32.totalorder %s974_s3, %s813_s23  ;;  %s45_s19 = int_to_ptr.vmem [resolvable:$true] %s44_s19 }
  0x25   :  { %p817_p3 = scmp.lt.u32.totalorder %s813_s23, %s974_s3 }
  0x27   :  { %p819_p4 = pnand %p817_p3, %p814_p2 }
  0x29   :  { %822 = shalt.err (!%p819_p4)
}
  0x2a   :  { %s823_s28 = scalar_lea.vmem %s45_s19, 4096  ;;  %p828_p6 = scmp.lt.s32.totalorder %s45_s19, %s45_s19 }
  0x2b   :  { %p824_p5 = scmp.ne.s32.totalorder %s45_s19, %s823_s28  ;;  %p829_p7 = scmp.lt.s32.totalorder %s823_s28, %s823_s28 }
  0x2d   :  { %p830_p8 = por %p829_p7, %p828_p6 }
  0x2f   :  { %p831_p9 = pnand %p830_p8, %p824_p5 }
  0x31   :  { %834 = shalt.err (!%p831_p9)
}
  0x32   :  { %50 = dma.hbm_to_vmem [thread:$0]  %s974_s3, 4096, %s45_s19, [#allocation6], %s865_s30, %s865_s30, %s866_s6  }
  0x33   :  { %857 = dma.done.wait [#allocation3], 256  }
  0x34   :  { %858 = vsyncadd [#allocation3], 4294967040 }
  0x35   :  { %859 = dma.done.wait [#allocation6], 8192  }
  0x36   :  { %860 = vsyncadd [#allocation6], 4294959104  ;;  %v670_v0 = vld [vmem:[#allocation5 + $0x4] ss:$8 sps:$4 sm:$0xff]   ;;  %v672_v1 = vld [vmem:[#allocation5] ss:$8 sps:$4 sm:$0xff]  }
  0x37   :  { %278 = vmatprep.subr.bf16.mxu0 %v670_v0  ;;  %v673_v2 = vld [vmem:[#allocation5 + $0x14] ss:$8 sps:$4 sm:$0xff]   ;;  %v675_v3 = vld [vmem:[#allocation5 + $0x10] ss:$8 sps:$4 sm:$0xff]   ;;  %v676_v4 = vld [vmem:[#allocation5 + $0x24] ss:$8 sps:$4 sm:$0xff]  }
  0x38   :  { %279 = vmatpush1.bf16.msra.mxu0 %v672_v1  ;;  %v678_v5 = vld [vmem:[#allocation5 + $0x20] ss:$8 sps:$4 sm:$0xff]   ;;  %v679_v6 = vld [vmem:[#allocation5 + $0x34] ss:$8 sps:$4 sm:$0xff]   ;;  %v681_v7 = vld [vmem:[#allocation5 + $0x30] ss:$8 sps:$4 sm:$0xff]  }
  0x39   :  { %280 = vmatprep.subr.bf16.mxu0 %v673_v2  ;;  %v682_v8 = vld [vmem:[#allocation5 + $0x44] ss:$8 sps:$4 sm:$0xff]   ;;  %v684_v9 = vld [vmem:[#allocation5 + $0x40] ss:$8 sps:$4 sm:$0xff]   ;;  %v685_v10 = vld [vmem:[#allocation5 + $0x54] ss:$8 sps:$4 sm:$0xff]   ;;  %v98_v2 = vlaneseq }
  0x3a   :  { %v687_v11 = vld [vmem:[#allocation5 + $0x50] ss:$8 sps:$4 sm:$0xff]   ;;  %v688_v12 = vld [vmem:[#allocation5 + $0x64] ss:$8 sps:$4 sm:$0xff]   ;;  %v690_v13 = vld [vmem:[#allocation5 + $0x60] ss:$8 sps:$4 sm:$0xff]  }
  0x3b   :  { %v691_v14 = vld [vmem:[#allocation5 + $0x74] ss:$8 sps:$4 sm:$0xff]   ;;  %v721_v16 = vld [vmem:[#allocation7 + $0x4] ss:$8 sps:$4 sm:$0xff]   ;;  %v723_v17 = vld [vmem:[#allocation7] ss:$8 sps:$4 sm:$0xff]  }
  0x3c   :  { %281 = vmatpush1.bf16.msra.mxu0 %v675_v3  ;;  %v720_v15 = vld [vmem:[#allocation2 + $0x4] ss:$8 sps:$4 sm:$0xff]   ;;  %531 = vmatprep.subr.bf16.mxu1 %v721_v16  ;;  %v726_v19 = vld [vmem:[#allocation7 + $0x10] ss:$8 sps:$4 sm:$0xff]   ;;  %v727_v21 = vld [vmem:[#allocation7 + $0x24] ss:$8 sps:$4 sm:$0xff]  }
  0x3d   :  { %282 = vmatprep.subr.bf16.mxu0 %v676_v4  ;;  %310 = vmatprep.mubr.bf16.mxu0 %v720_v15  ;;  %v724_v18 = vld [vmem:[#allocation7 + $0x14] ss:$8 sps:$4 sm:$0xff]   ;;  %v693_v20 = vld [vmem:[#allocation5 + $0x70] ss:$8 sps:$4 sm:$0xff]   ;;  %v694_v22 = vld [vmem:[#allocation5 + $0x84] ss:$8 sps:$4 sm:$0xff]  }
  0x3e   :  { %532 = vmatpush1.bf16.msra.mxu1 %v723_v17  ;;  %v729_v23 = vld [vmem:[#allocation7 + $0x20] ss:$8 sps:$4 sm:$0xff]   ;;  %v730_v25 = vld [vmem:[#allocation7 + $0x34] ss:$8 sps:$4 sm:$0xff]   ;;  %v732_v27 = vld [vmem:[#allocation7 + $0x30] ss:$8 sps:$4 sm:$0xff]  }
  0x3f   :  { %533 = vmatprep.subr.bf16.mxu1 %v724_v18  ;;  %v696_v24 = vld [vmem:[#allocation5 + $0x80] ss:$8 sps:$4 sm:$0xff]   ;;  %v697_v26 = vld [vmem:[#allocation5 + $0x94] ss:$8 sps:$4 sm:$0xff]   ;;  %v699_v28 = vld [vmem:[#allocation5 + $0x90] ss:$8 sps:$4 sm:$0xff]  }
  0x40   :  { %283 = vmatpush1.bf16.msra.mxu0 %v678_v5  ;;  %v733_v29 = vld [vmem:[#allocation7 + $0x44] ss:$8 sps:$4 sm:$0xff]   ;;  %v735_v31 = vld [vmem:[#allocation7 + $0x40] ss:$8 sps:$4 sm:$0xff]   ;;  %v736_v33 = vld [vmem:[#allocation7 + $0x54] ss:$8 sps:$4 sm:$0xff]  }
  0x41   :  { %284 = vmatprep.subr.bf16.mxu0 %v679_v6  ;;  %v700_v30 = vld [vmem:[#allocation5 + $0xa4] ss:$8 sps:$4 sm:$0xff]   ;;  %v702_v32 = vld [vmem:[#allocation5 + $0xa0] ss:$8 sps:$4 sm:$0xff]   ;;  %v703_v34 = vld [vmem:[#allocation5 + $0xb4] ss:$8 sps:$4 sm:$0xff]  }
  0x42   :  { %534 = vmatpush1.bf16.msra.mxu1 %v726_v19  ;;  %v738_v35 = vld [vmem:[#allocation7 + $0x50] ss:$8 sps:$4 sm:$0xff]   ;;  %v739_v37 = vld [vmem:[#allocation7 + $0x64] ss:$8 sps:$4 sm:$0xff]   ;;  %v741_v39 = vld [vmem:[#allocation7 + $0x60] ss:$8 sps:$4 sm:$0xff]  }
  0x43   :  { %535 = vmatprep.subr.bf16.mxu1 %v727_v21  ;;  %v705_v36 = vld [vmem:[#allocation5 + $0xb0] ss:$8 sps:$4 sm:$0xff]   ;;  %v706_v38 = vld [vmem:[#allocation5 + $0xc4] ss:$8 sps:$4 sm:$0xff]   ;;  %v708_v40 = vld [vmem:[#allocation5 + $0xc0] ss:$8 sps:$4 sm:$0xff]  }
  0x44   :  { %285 = vmatpush1.bf16.msra.mxu0 %v681_v7  ;;  %v742_v41 = vld [vmem:[#allocation7 + $0x74] ss:$8 sps:$4 sm:$0xff]   ;;  %v744_v43 = vld [vmem:[#allocation7 + $0x70] ss:$8 sps:$4 sm:$0xff]   ;;  %v745_v45 = vld [vmem:[#allocation7 + $0x84] ss:$8 sps:$4 sm:$0xff]  }
  0x45   :  { %286 = vmatprep.subr.bf16.mxu0 %v682_v8  ;;  %v709_v42 = vld [vmem:[#allocation5 + $0xd4] ss:$8 sps:$4 sm:$0xff]   ;;  %v711_v44 = vld [vmem:[#allocation5 + $0xd0] ss:$8 sps:$4 sm:$0xff]   ;;  %v712_v46 = vld [vmem:[#allocation5 + $0xe4] ss:$8 sps:$4 sm:$0xff]  }
  0x46   :  { %536 = vmatpush1.bf16.msra.mxu1 %v729_v23  ;;  %v747_v47 = vld [vmem:[#allocation7 + $0x80] ss:$8 sps:$4 sm:$0xff]   ;;  %v748_v49 = vld [vmem:[#allocation7 + $0x94] ss:$8 sps:$4 sm:$0xff]   ;;  %v750_v51 = vld [vmem:[#allocation7 + $0x90] ss:$8 sps:$4 sm:$0xff]  }
  0x47   :  { %537 = vmatprep.subr.bf16.mxu1 %v730_v25  ;;  %v714_v48 = vld [vmem:[#allocation5 + $0xe0] ss:$8 sps:$4 sm:$0xff]   ;;  %v715_v50 = vld [vmem:[#allocation5 + $0xf4] ss:$8 sps:$4 sm:$0xff]   ;;  %v717_v52 = vld [vmem:[#allocation5 + $0xf0] ss:$8 sps:$4 sm:$0xff]  }
  0x48   :  { %287 = vmatpush1.bf16.msra.mxu0 %v684_v9  ;;  %v751_v53 = vld [vmem:[#allocation7 + $0xa4] ss:$8 sps:$4 sm:$0xff]   ;;  %v718_v54 = vld [vmem:[#allocation2] ss:$8 sps:$4 sm:$0xff]   ;;  %v753_v55 = vld [vmem:[#allocation7 + $0xa0] ss:$8 sps:$4 sm:$0xff]  }
  0x49   :  { %288 = vmatprep.subr.bf16.mxu0 %v685_v10  ;;  %v754_v56 = vld [vmem:[#allocation7 + $0xb4] ss:$8 sps:$4 sm:$0xff]   ;;  %v756_v57 = vld [vmem:[#allocation7 + $0xb0] ss:$8 sps:$4 sm:$0xff]   ;;  %v757_v58 = vld [vmem:[#allocation7 + $0xc4] ss:$8 sps:$4 sm:$0xff]  }
  0x4a   :  { %538 = vmatpush1.bf16.msra.mxu1 %v732_v27  ;;  %v759_v59 = vld [vmem:[#allocation7 + $0xc0] ss:$8 sps:$4 sm:$0xff]   ;;  %v760_v60 = vld [vmem:[#allocation7 + $0xd4] ss:$8 sps:$4 sm:$0xff]   ;;  %v762_v61 = vld [vmem:[#allocation7 + $0xd0] ss:$8 sps:$4 sm:$0xff]  }
  0x4b   :  { %539 = vmatprep.subr.bf16.mxu1 %v733_v29  ;;  %v763_v62 = vld [vmem:[#allocation7 + $0xe4] ss:$8 sps:$4 sm:$0xff]   ;;  %v765_v63 = vld [vmem:[#allocation7 + $0xe0] ss:$8 sps:$4 sm:$0xff]   ;;  %v766_v0 = vld [vmem:[#allocation7 + $0xf4] ss:$8 sps:$4 sm:$0xff]  }
  0x4c   :  { %289 = vmatpush1.bf16.msra.mxu0 %v687_v11  ;;  %v768_v1 = vld [vmem:[#allocation7 + $0xf0] ss:$8 sps:$4 sm:$0xff]   ;;  %v99_v3 = vshrl.u32 %v98_v2, 7  ;;  %s868_s6 = smov [#allocation8]  }
  0x4d   :  { %290 = vmatprep.subr.bf16.mxu0 %v688_v12  ;;  %v96_v5 = vld [vmem:[%s973_s2] sm:$0x3]  ;;  %s583_s7 = sshll.u32 %s868_s6, 4  ;;  %s584_s7 = int_to_ptr.vmem [resolvable:$true] %s583_s7 }
  0x4e   :  { %540 = vmatpush1.bf16.msra.mxu1 %v735_v31  ;;  %v100_v4 = vsub.s32 0, %v99_v3  ;;  %v104_v6 = vsub.s32 1, %v99_v3  ;;  %v359_v23 = vld [vmem:[%s975_s4] sm:$0x3]  ;;  %s835_s8 = scalar_lea.vmem %s584_s7, 512  ;;  %p840_p11 = scmp.lt.s32.totalorder %s584_s7, %s584_s7 }
  0x4f   :  { %541 = vmatprep.subr.bf16.mxu1 %v736_v33  ;;  %p836_p10 = scmp.ne.s32.totalorder %s584_s7, %s835_s8  ;;  %p841_p12 = scmp.lt.s32.totalorder %s835_s8, %s835_s8 }
  0x50   :  { %291 = vmatpush1.bf16.msra.mxu0 %v690_v13  ;;  %v101_v7 = vrot.slane %v96_v5, %v100_v4  ;;  %v105_v8 = vrot.slane %v96_v5, %v104_v6  ;;  %v368_v25 = vrot.slane %v359_v23, %v104_v6 }
  0x51   :  { %292 = vmatprep.subr.bf16.mxu0 %v691_v14  ;;  %p842_p13 = por %p841_p12, %p840_p11 }
  0x52   :  { %542 = vmatpush1.bf16.msra.mxu1 %v738_v35 }
  0x53   :  { %543 = vmatprep.subr.bf16.mxu1 %v739_v37  ;;  %p843_p0 = pnand %p842_p13, %p836_p10 }
  0x54   :  { %293 = vmatpush1.bf16.msra.mxu0 %v693_v20 }
  0x55   :  { %294 = vmatprep.subr.bf16.mxu0 %v694_v22 }
  0x56   :  { %544 = vmatpush1.bf16.msra.mxu1 %v741_v39 }
  0x57   :  { %545 = vmatprep.subr.bf16.mxu1 %v742_v41 }
  0x58   :  { %295 = vmatpush1.bf16.msra.mxu0 %v696_v24  ;;  %v364_v24 = vrot.slane %v359_v23, %v100_v4 }
  0x59   :  { %296 = vmatprep.subr.bf16.mxu0 %v697_v26 }
  0x5a   :  { %546 = vmatpush1.bf16.msra.mxu1 %v744_v43 }
  0x5b   :  { %547 = vmatprep.subr.bf16.mxu1 %v745_v45 }
  0x5c   :  { %297 = vmatpush1.bf16.msra.mxu0 %v699_v28 }
  0x5d   :  { %298 = vmatprep.subr.bf16.mxu0 %v700_v30 }
  0x5e   :  { %548 = vmatpush1.bf16.msra.mxu1 %v747_v47 }
  0x5f   :  { %549 = vmatprep.subr.bf16.mxu1 %v748_v49 }
  0x60   :  { %299 = vmatpush1.bf16.msra.mxu0 %v702_v32 }
  0x61   :  { %300 = vmatprep.subr.bf16.mxu0 %v703_v34 }
  0x62   :  { %550 = vmatpush1.bf16.msra.mxu1 %v750_v51 }
  0x63   :  { %551 = vmatprep.subr.bf16.mxu1 %v751_v53 }
  0x64   :  { %301 = vmatpush1.bf16.msra.mxu0 %v705_v36 }
  0x65   :  { %302 = vmatprep.subr.bf16.mxu0 %v706_v38 }
  0x66   :  { %552 = vmatpush1.bf16.msra.mxu1 %v753_v55 }
  0x67   :  { %553 = vmatprep.subr.bf16.mxu1 %v754_v56 }
  0x68   :  { %303 = vmatpush1.bf16.msra.mxu0 %v708_v40 }
  0x69   :  { %304 = vmatprep.subr.bf16.mxu0 %v709_v42 }
  0x6a   :  { %554 = vmatpush1.bf16.msra.mxu1 %v756_v57 }
  0x6b   :  { %555 = vmatprep.subr.bf16.mxu1 %v757_v58 }
  0x6c   :  { %305 = vmatpush1.bf16.msra.mxu0 %v711_v44 }
  0x6d   :  { %306 = vmatprep.subr.bf16.mxu0 %v712_v46 }
  0x6e   :  { %556 = vmatpush1.bf16.msra.mxu1 %v759_v59 }
  0x6f   :  { %557 = vmatprep.subr.bf16.mxu1 %v760_v60 }
  0x70   :  { %307 = vmatpush1.bf16.msra.mxu0 %v714_v48 }
  0x71   :  { %308 = vmatprep.subr.bf16.mxu0 %v715_v50 }
  0x72   :  { %558 = vmatpush1.bf16.msra.mxu1 %v762_v61 }
  0x73   :  { %559 = vmatprep.subr.bf16.mxu1 %v763_v62 }
  0x74   :  { %309 = vmatpush1.bf16.msra.mxu0 %v717_v52 }
  0x76   :  { %560 = vmatpush1.bf16.msra.mxu1 %v765_v63 }
  0x77   :  { %311 = vmatmul.mubr.bf16.vlgmr.msra.gmra.mrb[0].mxu0 %v718_v54  ;;  %561 = vmatprep.subr.bf16.mxu1 %v766_v0 }
  0x7a   :  { %562 = vmatpush1.bf16.msra.mxu1 %v768_v1 }
 0x14a   :  { %v312_v9 = vpop.f32.mrb[0].mxu0 }
 0x14b   :  { %v313_v10 = vadd.f32 %v312_v9, %v101_v7  ;;  %v314_v11 = vpop.f32.mrb[1].mxu0 }
 0x14c   :  { %v315_v12 = vadd.f32 %v314_v11, %v105_v8  ;;  %v316_v13 = vpop.f32.mrb[2].mxu0 }
 0x14d   :  { %v317_v14 = vadd.f32 %v316_v13, %v101_v7  ;;  %v318_v15 = vpop.f32.mrb[3].mxu0  ;;  %v321_v17 = vmax.f32 %v313_v10, 0.0 }
 0x14e   :  { %v319_v16 = vadd.f32 %v318_v15, %v105_v8  ;;  %v322_v19 = vmax.f32 %v315_v12, 0.0 }
 0x14f   :  { %v323_v18 = vmax.f32 %v317_v14, 0.0 }
 0x150   :  { %v324_v20 = vmax.f32 %v319_v16, 0.0 }
 0x151   :  { %v325_v21 = vpack.c.bf16 %v323_v18, %v321_v17 }
 0x152   :  { %v326_v22 = vpack.c.bf16 %v324_v20, %v322_v19 }
 0x154   :  { %563 = vmatprep.mubr.bf16.mxu1 %v326_v22 }
 0x155   :  { %564 = vmatmul.mubr.bf16.vlgmr.msra.gmra.mrb[0].mxu1 %v325_v21 }
 0x228   :  { %v565_v26 = vpop.f32.mrb[0].mxu1 }
 0x229   :  { %v566_v27 = vadd.f32 %v565_v26, %v364_v24  ;;  %v567_v28 = vpop.f32.mrb[1].mxu1 }
 0x22a   :  { %v568_v29 = vadd.f32 %v567_v28, %v368_v25  ;;  %v569_v30 = vpop.f32.mrb[2].mxu1 }
 0x22b   :  { %574 = vst [vmem:[#allocation8] sm:$0xff] %v566_v27  ;;  %v570_v31 = vadd.f32 %v569_v30, %v364_v24  ;;  %v571_v32 = vpop.f32.mrb[3].mxu1 }
 0x22c   :  { %575 = vst [vmem:[#allocation8 + $0x8] sm:$0xff] %v568_v29  ;;  %v572_v33 = vadd.f32 %v571_v32, %v368_v25 }
 0x22d   :  { %576 = vst [vmem:[#allocation8 + $0x10] sm:$0xff] %v570_v31 }
 0x22e   :  { %577 = vst [vmem:[#allocation8 + $0x18] sm:$0xff] %v572_v33 }
 0x22f   :  { %846 = shalt.err (!%p843_p0)
}
 0x230   :  { %s847_s10 = scalar_lea.hbm %s976_s5, 512 }
 0x231   :  { %p848_p1 = scmp.ne.s32.totalorder %s976_s5, %s847_s10  ;;  %p851_p2 = scmp.lt.u32.totalorder %s847_s10, %s976_s5 }
 0x233   :  { %p853_p3 = pnand %p851_p2, %p848_p1 }
 0x235   :  { %856 = shalt.err (!%p853_p3)
}
 0x236   :  { %s869_s15 = smov 256   ;;  %s870_s16 = smov 16  }
 0x237   :  { %589 = dma.vmem_to_hbm [thread:$0]  %s584_s7, 512, %s976_s5, [#allocation4], %s869_s15, %s869_s15, %s870_s16  }
 0x238   :  { %861 = dma.done.wait [#allocation4], 512  }
 0x239   :  { %862 = vsyncadd [#allocation4], 4294966784 }
 0x23a   :  { %593 = vsyncpa [#allocation3], 1 }
 0x23b   :  { %594 = vsyncpa [#allocation6], 1 }
 0x23c   :  { %595 = vsyncpa [#allocation4], 1 }

</bundles_post_ra>
